<compile_context>
chip_gen: v7x
topology: tpu7x:2x2x1
jax: 0.10.0
libtpu: 0.0.40
codegen_flags: <defaults>
</compile_context>

<pallas_src>
import functools
import math

import jax
import jax.numpy as jnp
from jax.experimental import pallas as pl
from jax.experimental.pallas import tpu as pltpu

LANES = 128
SUBLANES = 8
MAX_TILE_ROWS = 2048   # (2048,128) f32 = 1 MiB/block; x2 inputs x2 buffers = 4 MiB VMEM
_LN2 = math.log(2.0)


def _stable_logcosh(x):
    """log(cosh(x)) = |x| + log1p(exp(-2|x|)) - log(2); overflow-free."""
    a = jnp.abs(x)
    return a + jnp.log1p(jnp.exp(-2.0 * a)) - jnp.float32(_LN2)


def _logcosh_partial_kernel(yt_ref, yp_ref, out_ref, acc_ref, *,
                            n_rows: int, tile_rows: int, needs_mask: bool):
    """Per-partition sum(logcosh(diff + 1e-12)) over valid rows of the bulk."""
    s = pl.program_id(1)
    n_steps = pl.num_programs(1)

    @pl.when(s == 0)
    def _():
        acc_ref[...] = jnp.zeros_like(acc_ref)

    diff = yt_ref[...].astype(jnp.float32) - yp_ref[...].astype(jnp.float32)
    val = _stable_logcosh(diff + jnp.float32(1e-12))   # (tile_rows, LANES) f32

    if needs_mask:
        # Only the globally-last tile (last partition, last step) overhangs
        # the (n_rows, LANES) bulk; mask its unspecified overhang rows.
        p = pl.program_id(0)
        n_parts = pl.num_programs(0)
        is_last_tile = jnp.logical_and(p == n_parts - 1, s == n_steps - 1)

        @pl.when(jnp.logical_not(is_last_tile))
        def _():
            acc_ref[...] += val.reshape(-1, SUBLANES, LANES).sum(axis=0)

        @pl.when(is_last_tile)
        def _():
            valid_rows = n_rows % tile_rows   # > 0 whenever needs_mask
            row = jax.lax.broadcasted_iota(jnp.int32, val.shape, 0)
            masked = jnp.where(row < valid_rows, val, jnp.float32(0.0))
            acc_ref[...] += masked.reshape(-1, SUBLANES, LANES).sum(axis=0)
    else:
        # Steady state: VPU adds into the (8,128) vector accumulator only.
        acc_ref[...] += val.reshape(-1, SUBLANES, LANES).sum(axis=0)

    @pl.when(s == n_steps - 1)
    def _():
        out_ref[0, 0] = jnp.sum(acc_ref[...])


def logcosh_loss(y_t: jax.Array, y_prime_t: jax.Array) -> jax.Array:
    """Scalar log-cosh loss, semantics matching the PyTorch module."""
    assert y_t.shape == y_prime_t.shape
    n = int(y_t.size)

    flat_t = y_t.reshape(-1)
    flat_p = y_prime_t.reshape(-1)

    n_rows = n // LANES
    rem = n - n_rows * LANES

    total = jnp.float32(0.0)

    if n_rows >= SUBLANES:
        n_bulk = n_rows * LANES
        # Largest multiple-of-8 row tile <= min(MAX_TILE_ROWS, n_rows).
        tile_rows = min(MAX_TILE_ROWS, (n_rows // SUBLANES) * SUBLANES)
        n_tiles = pl.cdiv(n_rows, tile_rows)
        needs_mask = (n_rows % tile_rows) != 0

        # Leading "parallel" axis: 2 partitions so v7x's 2 TensorCores each
        # stream half the tiles (per-partition partial sums, no races).
        # TODO(synk): odd tile counts > 1 fall back to a single partition;
        # could rebalance tile_rows to keep the 2-way split in that case.
        if n_tiles >= 2 and n_tiles % 2 == 0:
            num_parts = 2
        else:
            num_parts = 1
        steps = n_tiles // num_parts

        if rem == 0:
            bulk_t = flat_t.reshape(n_rows, LANES)
            bulk_p = flat_p.reshape(n_rows, LANES)
        else:
            bulk_t = flat_t[:n_bulk].reshape(n_rows, LANES)
            bulk_p = flat_p[:n_bulk].reshape(n_rows, LANES)

        kernel = functools.partial(
            _logcosh_partial_kernel, n_rows=n_rows, tile_rows=tile_rows,
            needs_mask=needs_mask)

        in_bytes = (y_t.dtype.itemsize + y_prime_t.dtype.itemsize) * n_bulk
        cost = pl.CostEstimate(
            flops=6 * n_bulk,
            transcendentals=2 * n_bulk,
            bytes_accessed=in_bytes + 4 * num_parts,
        )

        def in_map(p, s):
            return (p * steps + s, 0)

        partials = pl.pallas_call(
            kernel,
            out_shape=jax.ShapeDtypeStruct((num_parts, 1), jnp.float32),
            grid_spec=pltpu.PrefetchScalarGridSpec(
                num_scalar_prefetch=0,
                grid=(num_parts, steps),
                in_specs=[
                    pl.BlockSpec((tile_rows, LANES), in_map),
                    pl.BlockSpec((tile_rows, LANES), in_map),
                ],
                out_specs=pl.BlockSpec(
                    (1, 1), lambda p, s: (p, 0), memory_space=pltpu.SMEM),
                scratch_shapes=[pltpu.VMEM((SUBLANES, LANES), jnp.float32)],
            ),
            compiler_params=pltpu.CompilerParams(
                dimension_semantics=("parallel", "arbitrary"),
            ),
            cost_estimate=cost,
        )(bulk_t, bulk_p)
        total = total + jnp.sum(partials)
    else:
        # Tiny inputs (< 8 full 128-lane rows): not worth a kernel launch.
        n_bulk = 0
        rem = n

    if rem > 0:
        # <128-element tail (or tiny-input fallback) in plain JAX; same math.
        tail_t = flat_t[n_bulk:].astype(jnp.float32)
        tail_p = flat_p[n_bulk:].astype(jnp.float32)
        total = total + jnp.sum(
            _stable_logcosh((tail_t - tail_p) + jnp.float32(1e-12)))

    return (total / jnp.float32(n)).astype(jnp.float32)


if __name__ == "__main__":
    key = jax.random.PRNGKey(0)
    k1, k2 = jax.random.split(key)
    shape = (2, 4, 16, 16)  # NCHW-style example input
    y_t = jax.random.normal(k1, shape, dtype=jnp.float32)
    y_prime_t = jax.random.normal(k2, shape, dtype=jnp.float32)

    loss = logcosh_loss(y_t, y_prime_t)
    jax.block_until_ready(loss)

    # Pure-JAX reference check (same semantics as the PyTorch module).
    ref = jnp.mean(jnp.log(jnp.cosh((y_t - y_prime_t) + 1e-12)))
    assert jnp.allclose(loss, ref, rtol=1e-5, atol=1e-5), (loss, ref)

    print("KERNEL_OK")
</pallas_src>

<mosaic_0001>
module attributes {stable_mosaic.version = 11 : i64} {
  func.func @_logcosh_partial_kernel(%arg0: i32, %arg1: i32, %arg2: memref<16x128xf32, #tpu.memory_space<vmem>>, %arg3: memref<16x128xf32, #tpu.memory_space<vmem>>, %arg4: memref<1x1xf32, #tpu.memory_space<smem>>, %arg5: memref<8x128xf32, #tpu.memory_space<vmem>>) attributes {dimension_semantics = [#tpu.dimension_semantics<parallel>, #tpu.dimension_semantics<arbitrary>], iteration_bounds = array<i64: 1, 1>, scalar_prefetch = 0 : i64, scratch_operands = 1 : i64, tpu.core_type = #tpu.core_type<tc>, window_params = [{transform_indices = @transform_0, window_bounds = array<i64: 16, 128>}, {transform_indices = @transform_1, window_bounds = array<i64: 16, 128>}, {transform_indices = @transform_2, window_bounds = array<i64: 1, 1>}]} {
    %c0_i32 = arith.constant 0 : i32
    %0 = arith.cmpi eq, %arg1, %c0_i32 : i32
    %1 = arith.extui %0 : i1 to i32
    %c0_i32_0 = arith.constant 0 : i32
    %2 = arith.cmpi ne, %1, %c0_i32_0 : i32
    scf.if %2 {
      %cst_13 = arith.constant 0.000000e+00 : f32
      %24 = vector.broadcast %cst_13 : f32 to vector<8x128xf32>
      %c0_14 = arith.constant 0 : index
      %c0_15 = arith.constant 0 : index
      %25 = vector.load %arg5[%c0_14, %c0_15] : memref<8x128xf32, #tpu.memory_space<vmem>>, vector<8x128xf32>
      tpu.vector_store %arg5[%c0_14, %c0_15], %24 {strides = array<i32>} : memref<8x128xf32, #tpu.memory_space<vmem>>, vector<8x128xf32>,
    } else {
    }
    %c0 = arith.constant 0 : index
    %c0_1 = arith.constant 0 : index
    %3 = vector.load %arg2[%c0, %c0_1] : memref<16x128xf32, #tpu.memory_space<vmem>>, vector<16x128xf32>
    %c0_2 = arith.constant 0 : index
    %c0_3 = arith.constant 0 : index
    %4 = vector.load %arg3[%c0_2, %c0_3] : memref<16x128xf32, #tpu.memory_space<vmem>>, vector<16x128xf32>
    %5 = arith.subf %3, %4 : vector<16x128xf32>
    %cst = arith.constant 9.99999996E-13 : f32
    %6 = vector.broadcast %cst : f32 to vector<16x128xf32>
    %7 = arith.addf %5, %6 : vector<16x128xf32>
    %8 = math.absf %7 : vector<16x128xf32>
    %cst_4 = arith.constant -2.000000e+00 : f32
    %9 = vector.broadcast %cst_4 : f32 to vector<16x128xf32>
    %10 = arith.mulf %9, %8 : vector<16x128xf32>
    %11 = math.exp %10 : vector<16x128xf32>
    %12 = math.log1p %11 : vector<16x128xf32>
    %13 = arith.addf %8, %12 : vector<16x128xf32>
    %cst_5 = arith.constant 0.693147182 : f32
    %14 = vector.broadcast %cst_5 : f32 to vector<16x128xf32>
    %15 = arith.subf %13, %14 : vector<16x128xf32>
    %c0_6 = arith.constant 0 : index
    %c0_7 = arith.constant 0 : index
    %16 = vector.load %arg5[%c0_6, %c0_7] : memref<8x128xf32, #tpu.memory_space<vmem>>, vector<8x128xf32>
    %17 = vector.shape_cast %15 : vector<16x128xf32> to vector<2x8x128xf32>
    %cst_8 = arith.constant dense<0.000000e+00> : vector<8x128xf32>
    %18 = vector.multi_reduction <add>, %17, %cst_8 [0] : vector<2x8x128xf32> to vector<8x128xf32>
    %19 = arith.addf %16, %18 : vector<8x128xf32>
    %c0_9 = arith.constant 0 : index
    %c0_10 = arith.constant 0 : index
    %20 = vector.load %arg5[%c0_9, %c0_10] : memref<8x128xf32, #tpu.memory_space<vmem>>, vector<8x128xf32>
    tpu.vector_store %arg5[%c0_9, %c0_10], %19 {strides = array<i32>} : memref<8x128xf32, #tpu.memory_space<vmem>>, vector<8x128xf32>,
    %c0_i32_11 = arith.constant 0 : i32
    %21 = arith.cmpi eq, %arg1, %c0_i32_11 : i32
    %22 = arith.extui %21 : i1 to i32
    %c0_i32_12 = arith.constant 0 : i32
    %23 = arith.cmpi ne, %22, %c0_i32_12 : i32
    scf.if %23 {
      %c0_13 = arith.constant 0 : index
      %c0_14 = arith.constant 0 : index
      %24 = vector.load %arg5[%c0_13, %c0_14] : memref<8x128xf32, #tpu.memory_space<vmem>>, vector<8x128xf32>
      %25 = vector.shape_cast %24 : vector<8x128xf32> to vector<1x8x128xf32>
      %cst_15 = arith.constant dense<0.000000e+00> : vector<1xf32>
      %26 = vector.multi_reduction <add>, %25, %cst_15 [1, 2] : vector<1x8x128xf32> to vector<1xf32>
      %27 = vector.shape_cast %26 : vector<1xf32> to vector<1x1x1xf32>
      %28 = vector.extract %27[0, 0, 0] : f32 from vector<1x1x1xf32>
      %c0_16 = arith.constant 0 : index
      %c0_17 = arith.constant 0 : index
      %29 = memref.load %arg4[%c0_16, %c0_17] : memref<1x1xf32, #tpu.memory_space<smem>>
      memref.store %28, %arg4[%c0_16, %c0_17] : memref<1x1xf32, #tpu.memory_space<smem>>
    } else {
    }
    return
  }
  func.func @transform_0(%arg0: i32, %arg1: i32) -> (i32, i32) {
    %c1_i32 = arith.constant 1 : i32
    %0 = arith.muli %arg0, %c1_i32 : i32
    %1 = arith.addi %0, %arg1 : i32
    %c0_i32 = arith.constant 0 : i32
    %c0_i32_0 = arith.constant 0 : i32
    return %1, %c0_i32 : i32, i32
  }
  func.func @transform_1(%arg0: i32, %arg1: i32) -> (i32, i32) {
    %c1_i32 = arith.constant 1 : i32
    %0 = arith.muli %arg0, %c1_i32 : i32
    %1 = arith.addi %0, %arg1 : i32
    %c0_i32 = arith.constant 0 : i32
    %c0_i32_0 = arith.constant 0 : i32
    return %1, %c0_i32 : i32, i32
  }
  func.func @transform_2(%arg0: i32, %arg1: i32) -> (i32, i32) {
    %c0_i32 = arith.constant 0 : i32
    %c0_i32_0 = arith.constant 0 : i32
    return %arg0, %c0_i32 : i32, i32
  }
}

</mosaic_0001>

<bundles_post_ra>
// kernel: tpu_custom_call.1
= control target key start
LH: loop header
LB: loop body
LE: loop exit
PB: predicated region body
PF: predicated region fallthrough
CT: control target
= control target key end

     0   :  { %7 = vsyncpa [#allocation4], 0  ;;  %s262_s0 = inlined_call_operand.hbm [shape: f32[16,128], index: 0, kind: input, shape index: {}]   ;;  %s263_s1 = inlined_call_operand.hbm [shape: f32[16,128], index: 1, kind: input, shape index: {}]   ;;  %s264_s2 = inlined_call_operand.hbm [shape: f32[1,1], index: 2, kind: output, shape index: {}]  }
   0x1   :  { %8 = vsyncpa [#allocation7], 0 }
   0x2   :  { %9 = vsyncpa [#allocation5], 0  ;;  %s206_s9 = smov [#allocation3]   ;;  %s146_s13 = scalar_lea.hbm %s262_s0, 256 }
   0x3   :  { %s19_s10 = sshll.u32 %s206_s9, 4  ;;  %p147_p0 = scmp.ne.s32.totalorder %s262_s0, %s146_s13  ;;  %s20_s10 = int_to_ptr.vmem [resolvable:$true] %s19_s10 }
   0x4   :  { %p150_p1 = scmp.lt.u32.totalorder %s146_s13, %s262_s0 }
   0x6   :  { %p152_p2 = pnand %p150_p1, %p147_p0 }
   0x8   :  { %155 = shalt.err (!%p152_p2)
}
   0x9   :  { %s156_s18 = scalar_lea.vmem %s20_s10, 256  ;;  %p161_p4 = scmp.lt.s32.totalorder %s20_s10, %s20_s10 }
   0xa   :  { %p157_p3 = scmp.ne.s32.totalorder %s20_s10, %s156_s18  ;;  %p162_p5 = scmp.lt.s32.totalorder %s156_s18, %s156_s18 }
   0xc   :  { %p163_p6 = por %p162_p5, %p161_p4 }
   0xe   :  { %p164_p7 = pnand %p163_p6, %p157_p3 }
  0x10   :  { %167 = shalt.err (!%p164_p7)
}
  0x11   :  { %s207_s19 = smov 128   ;;  %s208_s20 = smov 8  }
  0x12   :  { %25 = dma.hbm_to_vmem [thread:$0]  %s262_s0, 256, %s20_s10, [#allocation4], %s207_s19, %s207_s19, %s208_s20  }
  0x13   :  { %s209_s23 = smov [#allocation6]   ;;  %s168_s27 = scalar_lea.hbm %s263_s1, 256 }
  0x14   :  { %s35_s24 = sshll.u32 %s209_s23, 4  ;;  %p169_p8 = scmp.ne.s32.totalorder %s263_s1, %s168_s27  ;;  %s36_s24 = int_to_ptr.vmem [resolvable:$true] %s35_s24 }
  0x15   :  { %p172_p9 = scmp.lt.u32.totalorder %s168_s27, %s263_s1 }
  0x17   :  { %p174_p10 = pnand %p172_p9, %p169_p8 }
  0x19   :  { %177 = shalt.err (!%p174_p10)
}
  0x1a   :  { %s178_s4 = scalar_lea.vmem %s36_s24, 256  ;;  %p183_p12 = scmp.lt.s32.totalorder %s36_s24, %s36_s24 }
  0x1b   :  { %p179_p11 = scmp.ne.s32.totalorder %s36_s24, %s178_s4  ;;  %p184_p13 = scmp.lt.s32.totalorder %s178_s4, %s178_s4 }
  0x1d   :  { %p185_p0 = por %p184_p13, %p183_p12 }
  0x1f   :  { %p186_p1 = pnand %p185_p0, %p179_p11 }
  0x21   :  { %189 = shalt.err (!%p186_p1)
}
  0x22   :  { %41 = dma.hbm_to_vmem [thread:$0]  %s263_s1, 256, %s36_s24, [#allocation7], %s207_s19, %s207_s19, %s208_s20  }
  0x23   :  { %200 = dma.done.wait [#allocation4], 256  }
  0x24   :  { %201 = vsyncadd [#allocation4], 4294967040 }
  0x25   :  { %202 = dma.done.wait [#allocation7], 256  }
  0x26   :  { %203 = vsyncadd [#allocation7], 4294967040  ;;  %v57_v0 = vld [vmem:[#allocation3] sm:$0xff]  ;;  %v58_v1 = vld [vmem:[#allocation3 + $0x8] sm:$0xff]  ;;  %s190_s8 = scalar_lea.hbm %s264_s2, 16 }
  0x27   :  { %v59_v2 = vld [vmem:[#allocation6] sm:$0xff]  ;;  %v60_v3 = vld [vmem:[#allocation6 + $0x8] sm:$0xff]  ;;  %p191_p2 = scmp.ne.s32.totalorder %s264_s2, %s190_s8  ;;  %p194_p3 = scmp.lt.u32.totalorder %s190_s8, %s264_s2 }
  0x28   :  { %v61_v4 = vsub.f32 %v57_v0, %v59_v2  ;;  %v62_v5 = vsub.f32 %v58_v1, %v60_v3 }
  0x29   :  { %p196_p4 = pnand %p194_p3, %p191_p2 }
  0x2a   :  { %v63_v6 = vadd.f32 1e-12, %v61_v4  ;;  %v64_v7 = vadd.f32 1e-12, %v62_v5 }
  0x2c   :  { %v65_v8 = vand.u32 2147483647, %v63_v6  ;;  %v66_v9 = vand.u32 2147483647, %v64_v7 }
  0x2e   :  { %v67_v10 = vmul.f32 -2.0, %v65_v8  ;;  %v68_v11 = vmul.f32 -2.0, %v66_v9 }
  0x30   :  { %v69_v12 = vmul.f32 1.442695, %v67_v10  ;;  %v71_v13 = vmul.f32 1.442695, %v68_v11 }
  0x32   :  { %138 = vpow2.f32 %v69_v12 }
  0x33   :  { %140 = vpow2.f32 %v71_v13 }
  0x3c   :  { %v139_v14 = vpop.eup %138 }
  0x3d   :  { %v141_v15 = vpop.eup %140  ;;  %v73_v16 = vadd.f32 1.0, %v139_v14  ;;  %v76_v18 = vmul.f32 -0.5, %v139_v14  ;;  %v79_v21 = vand.u32 2147483647, %v139_v14 }
  0x3e   :  { %v82_v17 = vadd.f32 1.0, %v141_v15  ;;  %v85_v19 = vmul.f32 -0.5, %v141_v15  ;;  %v88_v23 = vand.u32 2147483647, %v141_v15 }
  0x3f   :  { %142 = vlog2.f32 %v73_v16  ;;  %v77_v20 = vadd.f32 1.0, %v76_v18  ;;  %vm80_vm0 = vcmp.lt.f32.partialorder %v79_v21, 0.0004427343 }
  0x40   :  { %144 = vlog2.f32 %v82_v17  ;;  %v86_v22 = vadd.f32 1.0, %v85_v19  ;;  %vm89_vm1 = vcmp.lt.f32.partialorder %v88_v23, 0.0004427343 }
  0x41   :  { %v78_v24 = vmul.f32 %v139_v14, %v77_v20 }
  0x42   :  { %v87_v26 = vmul.f32 %v141_v15, %v86_v22 }
  0x49   :  { %v143_v25 = vpop.eup %142 }
  0x4a   :  { %v145_v27 = vpop.eup %144  ;;  %v75_v28 = vmul.f32 0.6931472, %v143_v25 }
  0x4b   :  { %v84_v29 = vmul.f32 0.6931472, %v145_v27 }
  0x4c   :  { %v81_v30 = vsel %vm80_vm0, %v78_v24, %v75_v28 }
  0x4d   :  { %v90_v31 = vsel %vm89_vm1, %v87_v26, %v84_v29  ;;  %v91_v32 = vadd.f32 %v81_v30, %v65_v8 }
  0x4e   :  { %v92_v33 = vadd.f32 %v90_v31, %v66_v9 }
  0x4f   :  { %v129_v34 = vadd.f32 -0.6931472, %v91_v32 }
  0x50   :  { %v130_v35 = vadd.f32 -0.6931472, %v92_v33 }
  0x52   :  { %v96_v36 = vadd.f32 %v130_v35, %v129_v34 }
  0x54   :  { %103 = vadd.xlane.f32.xlu0 %v96_v36 }
  0xe1   :  { %v104_v37 = vpop.xlane.xlu0 %103 }
  0xe2   :  { %v105_v38 = vrot.slane %v104_v37, 4 }
  0xe4   :  { %v106_v39 = vadd.f32 %v105_v38, %v104_v37 }
  0xe6   :  { %v107_v40 = vrot.slane %v106_v39, 2 }
  0xe8   :  { %v108_v41 = vadd.f32 %v107_v40, %v106_v39 }
  0xea   :  { %v109_v42 = vrot.slane %v108_v41, 1 }
  0xec   :  { %v110_v43 = vadd.f32 %v109_v42, %v108_v41 }
  0xee   :  { %131 = vpush %v110_v43 }
 0x11f   :  { %s132_s1 = spop %131 }
 0x120   :  { %113 = sst [smem:[#allocation8]] %s132_s1 }
 0x121   :  { %199 = shalt.err (!%p196_p4)
}
 0x122   :  { %s210_s13 = smov [#allocation8]  }
 0x123   :  { %121 = dma.smem_to_hbm %s210_s13, 16, %s264_s2, [#allocation5]  }
 0x124   :  { %204 = dma.done.wait [#allocation5], 16  }
 0x125   :  { %205 = vsyncadd [#allocation5], 4294967280 }
 0x126   :  { %125 = sfence }
 0x127   :  { %126 = vsyncpa [#allocation4], 1 }
 0x128   :  { %127 = vsyncpa [#allocation7], 1 }
 0x129   :  { %128 = vsyncpa [#allocation5], 1 }

</bundles_post_ra>
